<compile_context>
chip_gen: v6e
topology: v6e:2x2x1
jax: 0.10.0
libtpu: 0.0.40
codegen_flags: <defaults>
</compile_context>

<pallas_src>
import functools

import jax
import jax.numpy as jnp
from jax.experimental import pallas as pl
from jax.experimental.pallas import tpu as pltpu

_LANES = 128
_SUBLANES = 8
_MAX_TILE_ROWS = 1024   # (1024,128) f32 = 512 KiB/buffer; sized for all generations
_SMOOTH = 1.0


def _round_up(x, m):
    return (x + m - 1) // m * m


def _dice_partials_kernel(pred_ref, targ_ref, out_ref, *, normalize, rows,
                          tile_rows, steps, needs_mask):
    c = pl.program_id(0)   # parallel chunk (megacore split on v7x)
    s = pl.program_id(1)   # sequential reduction step within the chunk

    @pl.when(s == 0)
    def _init():
        out_ref[...] = jnp.zeros_like(out_ref)

    p = pred_ref[...].astype(jnp.float32)
    t = targ_ref[...].astype(jnp.float32)
    if normalize:
        p = jax.nn.sigmoid(p)

    if needs_mask:
        # Zero out rows beyond the valid range (partial last tile and/or
        # clamped trailing blocks of an over-allocated chunk).
        row0 = (c * steps + s) * tile_rows
        row_idx = row0 + jax.lax.broadcasted_iota(
            jnp.int32, (tile_rows, _LANES), 0)
        valid = row_idx < rows
        p = jnp.where(valid, p, 0.0)
        t = jnp.where(valid, t, 0.0)

    def fold(x):
        # (tile_rows, 128) -> (8, 128): vreg-aligned groups, pure VALU adds.
        return jnp.sum(x.reshape(-1, _SUBLANES, _LANES), axis=0)

    out_ref[0, 0, :, :] += fold(p * t)   # intersection partial
    out_ref[0, 1, :, :] += fold(p)       # sum(pred) partial
    out_ref[0, 2, :, :] += fold(t)       # sum(targ) partial


def dice_loss(pred, targ, normalize: bool = True, num_chunks: int = 2):
    assert pred.shape == targ.shape, "pred and targ must have the same shape"
    n = pred.size

    # Non-float inputs (e.g. bool/int masks) need a cast; float inputs stream
    # in their native dtype and are upcast on-chip.
    if not jnp.issubdtype(pred.dtype, jnp.floating):
        pred = pred.astype(jnp.float32)
    if not jnp.issubdtype(targ.dtype, jnp.floating):
        targ = targ.astype(jnp.float32)

    flat_p = pred.reshape(-1)
    flat_t = targ.reshape(-1)

    rem = n % _LANES
    if rem:
        # Only for non-lane-aligned sizes: pad to the next multiple of 128.
        # Pad values contribute exactly 0 to every accumulated sum.
        pad = _LANES - rem
        pred_pad = -1e9 if normalize else 0.0   # sigmoid(-1e9) == 0.0 in f32
        flat_p = jnp.pad(flat_p, (0, pad), constant_values=pred_pad)
        flat_t = jnp.pad(flat_t, (0, pad), constant_values=0)

    rows = flat_p.size // _LANES
    pred2d = flat_p.reshape(rows, _LANES)
    targ2d = flat_t.reshape(rows, _LANES)

    tile_rows = min(_MAX_TILE_ROWS, _round_up(rows, _SUBLANES))
    blocks_total = pl.cdiv(rows, tile_rows)
    num_par = max(1, min(num_chunks, blocks_total))
    steps = pl.cdiv(blocks_total, num_par)
    needs_mask = (num_par * steps * tile_rows) != rows

    def in_map(c, s):
        # Clamp so an over-allocated trailing chunk never indexes past the
        # last block; the in-kernel row mask zeroes any duplicated rows.
        return (jnp.minimum(c * steps + s, blocks_total - 1), 0)

    kernel = functools.partial(
        _dice_partials_kernel, normalize=normalize, rows=rows,
        tile_rows=tile_rows, steps=steps, needs_mask=needs_mask)

    partials = pl.pallas_call(
        kernel,
        out_shape=jax.ShapeDtypeStruct(
            (num_par, 3, _SUBLANES, _LANES), jnp.float32),
        grid_spec=pltpu.PrefetchScalarGridSpec(
            num_scalar_prefetch=0,
            grid=(num_par, steps),
            in_specs=[
                pl.BlockSpec((tile_rows, _LANES), in_map),
                pl.BlockSpec((tile_rows, _LANES), in_map),
            ],
            out_specs=pl.BlockSpec((1, 3, _SUBLANES, _LANES),
                                   lambda c, s: (c, 0, 0, 0)),
        ),
        compiler_params=pltpu.CompilerParams(
            dimension_semantics=("parallel", "arbitrary"),
        ),
    )(pred2d, targ2d)

    # Tiny final combine (also merges the per-core partials on v7x).
    sums = jnp.sum(partials, axis=(0, 2, 3))              # (3,)
    intersection, sum_p, sum_t = sums[0], sums[1], sums[2]
    dice_score = (2.0 * intersection + _SMOOTH) / (sum_p + sum_t + _SMOOTH)
    return 1.0 - dice_score


def _dice_loss_ref(pred, targ, normalize: bool = True):
    # Pure-JAX reference mirroring the PyTorch module exactly.
    smooth = 1.0
    p = jax.nn.sigmoid(pred) if normalize else pred
    intersection = jnp.sum(p * targ)
    dice_score = (2.0 * intersection + smooth) / (jnp.sum(p) + jnp.sum(targ) + smooth)
    return 1.0 - dice_score


if __name__ == "__main__":
    key = jax.random.PRNGKey(0)

    cases = [
        ((2, 4, 16, 16), True),     # small NCHW, lane-aligned, single tile
        ((3, 5, 7, 11), True),      # ragged size (not multiple of 128): pad + mask path
        ((4, 3, 153, 160), True),   # multi-tile, 2-chunk parallel split, partial last tile
        ((2, 4, 16, 16), False),    # normalize=False path
    ]
    for shape, normalize in cases:
        key, k1, k2 = jax.random.split(key, 3)
        pred = jax.random.normal(k1, shape, dtype=jnp.float32)
        targ = (jax.random.uniform(k2, shape) > 0.5).astype(jnp.float32)

        loss = jax.block_until_ready(dice_loss(pred, targ, normalize=normalize))
        ref = _dice_loss_ref(pred, targ, normalize=normalize)
        assert jnp.allclose(loss, ref, rtol=1e-5, atol=1e-5), (shape, normalize, loss, ref)

    print("KERNEL_OK")
</pallas_src>

<mosaic_0001>
module attributes {stable_mosaic.version = 11 : i64} {
  func.func @_dice_partials_kernel(%arg0: i32, %arg1: i32, %arg2: memref<16x128xf32, #tpu.memory_space<vmem>>, %arg3: memref<16x128xf32, #tpu.memory_space<vmem>>, %arg4: memref<1x3x8x128xf32, #tpu.memory_space<vmem>>) attributes {dimension_semantics = [#tpu.dimension_semantics<parallel>, #tpu.dimension_semantics<arbitrary>], iteration_bounds = array<i64: 1, 1>, scalar_prefetch = 0 : i64, scratch_operands = 0 : i64, tpu.core_type = #tpu.core_type<tc>, window_params = [{transform_indices = @transform_0, window_bounds = array<i64: 16, 128>}, {transform_indices = @transform_1, window_bounds = array<i64: 16, 128>}, {transform_indices = @transform_2, window_bounds = array<i64: 1, 3, 8, 128>}]} {
    %c0_i32 = arith.constant 0 : i32
    %0 = arith.cmpi eq, %arg1, %c0_i32 : i32
    %1 = arith.extui %0 : i1 to i32
    %c0_i32_0 = arith.constant 0 : i32
    %2 = arith.cmpi ne, %1, %c0_i32_0 : i32
    scf.if %2 {
      %cst_29 = arith.constant 0.000000e+00 : f32
      %35 = vector.broadcast %cst_29 : f32 to vector<1x3x8x128xf32>
      %c0_30 = arith.constant 0 : index
      %c0_31 = arith.constant 0 : index
      %c0_32 = arith.constant 0 : index
      %c0_33 = arith.constant 0 : index
      %36 = vector.load %arg4[%c0_30, %c0_31, %c0_32, %c0_33] : memref<1x3x8x128xf32, #tpu.memory_space<vmem>>, vector<1x3x8x128xf32>
      tpu.vector_store %arg4[%c0_30, %c0_31, %c0_32, %c0_33], %35 {strides = array<i32>} : memref<1x3x8x128xf32, #tpu.memory_space<vmem>>, vector<1x3x8x128xf32>,
    } else {
    }
    %c0 = arith.constant 0 : index
    %c0_1 = arith.constant 0 : index
    %3 = vector.load %arg2[%c0, %c0_1] : memref<16x128xf32, #tpu.memory_space<vmem>>, vector<16x128xf32>
    %c0_2 = arith.constant 0 : index
    %c0_3 = arith.constant 0 : index
    %4 = vector.load %arg3[%c0_2, %c0_3] : memref<16x128xf32, #tpu.memory_space<vmem>>, vector<16x128xf32>
    %5 = arith.negf %3 : vector<16x128xf32>
    %6 = math.exp %5 : vector<16x128xf32>
    %cst = arith.constant 1.000000e+00 : f32
    %7 = vector.broadcast %cst : f32 to vector<16x128xf32>
    %8 = arith.addf %7, %6 : vector<16x128xf32>
    %9 = arith.divf %7, %8 : vector<16x128xf32>
    %c0_4 = arith.constant 0 : index
    %c0_5 = arith.constant 0 : index
    %c0_6 = arith.constant 0 : index
    %c0_7 = arith.constant 0 : index
    %10 = vector.load %arg4[%c0_4, %c0_5, %c0_6, %c0_7] : memref<1x3x8x128xf32, #tpu.memory_space<vmem>>, vector<1x1x8x128xf32>
    %11 = vector.shape_cast %10 : vector<1x1x8x128xf32> to vector<8x128xf32>
    %12 = arith.mulf %9, %4 : vector<16x128xf32>
    %13 = vector.shape_cast %12 : vector<16x128xf32> to vector<2x8x128xf32>
    %cst_8 = arith.constant dense<0.000000e+00> : vector<8x128xf32>
    %14 = vector.multi_reduction <add>, %13, %cst_8 [0] : vector<2x8x128xf32> to vector<8x128xf32>
    %15 = arith.addf %11, %14 : vector<8x128xf32>
    %c0_9 = arith.constant 0 : index
    %c0_10 = arith.constant 0 : index
    %c0_11 = arith.constant 0 : index
    %c0_12 = arith.constant 0 : index
    %16 = vector.load %arg4[%c0_9, %c0_10, %c0_11, %c0_12] : memref<1x3x8x128xf32, #tpu.memory_space<vmem>>, vector<1x1x8x128xf32>
    %17 = vector.shape_cast %16 : vector<1x1x8x128xf32> to vector<8x128xf32>
    %18 = vector.shape_cast %15 : vector<8x128xf32> to vector<1x1x8x128xf32>
    tpu.vector_store %arg4[%c0_9, %c0_10, %c0_11, %c0_12], %18 {strides = array<i32>} : memref<1x3x8x128xf32, #tpu.memory_space<vmem>>, vector<1x1x8x128xf32>,
    %c0_13 = arith.constant 0 : index
    %c1 = arith.constant 1 : index
    %c0_14 = arith.constant 0 : index
    %c0_15 = arith.constant 0 : index
    %19 = vector.load %arg4[%c0_13, %c1, %c0_14, %c0_15] : memref<1x3x8x128xf32, #tpu.memory_space<vmem>>, vector<1x1x8x128xf32>
    %20 = vector.shape_cast %19 : vector<1x1x8x128xf32> to vector<8x128xf32>
    %21 = vector.shape_cast %9 : vector<16x128xf32> to vector<2x8x128xf32>
    %cst_16 = arith.constant dense<0.000000e+00> : vector<8x128xf32>
    %22 = vector.multi_reduction <add>, %21, %cst_16 [0] : vector<2x8x128xf32> to vector<8x128xf32>
    %23 = arith.addf %20, %22 : vector<8x128xf32>
    %c0_17 = arith.constant 0 : index
    %c1_18 = arith.constant 1 : index
    %c0_19 = arith.constant 0 : index
    %c0_20 = arith.constant 0 : index
    %24 = vector.load %arg4[%c0_17, %c1_18, %c0_19, %c0_20] : memref<1x3x8x128xf32, #tpu.memory_space<vmem>>, vector<1x1x8x128xf32>
    %25 = vector.shape_cast %24 : vector<1x1x8x128xf32> to vector<8x128xf32>
    %26 = vector.shape_cast %23 : vector<8x128xf32> to vector<1x1x8x128xf32>
    tpu.vector_store %arg4[%c0_17, %c1_18, %c0_19, %c0_20], %26 {strides = array<i32>} : memref<1x3x8x128xf32, #tpu.memory_space<vmem>>, vector<1x1x8x128xf32>,
    %c0_21 = arith.constant 0 : index
    %c2 = arith.constant 2 : index
    %c0_22 = arith.constant 0 : index
    %c0_23 = arith.constant 0 : index
    %27 = vector.load %arg4[%c0_21, %c2, %c0_22, %c0_23] : memref<1x3x8x128xf32, #tpu.memory_space<vmem>>, vector<1x1x8x128xf32>
    %28 = vector.shape_cast %27 : vector<1x1x8x128xf32> to vector<8x128xf32>
    %29 = vector.shape_cast %4 : vector<16x128xf32> to vector<2x8x128xf32>
    %cst_24 = arith.constant dense<0.000000e+00> : vector<8x128xf32>
    %30 = vector.multi_reduction <add>, %29, %cst_24 [0] : vector<2x8x128xf32> to vector<8x128xf32>
    %31 = arith.addf %28, %30 : vector<8x128xf32>
    %c0_25 = arith.constant 0 : index
    %c2_26 = arith.constant 2 : index
    %c0_27 = arith.constant 0 : index
    %c0_28 = arith.constant 0 : index
    %32 = vector.load %arg4[%c0_25, %c2_26, %c0_27, %c0_28] : memref<1x3x8x128xf32, #tpu.memory_space<vmem>>, vector<1x1x8x128xf32>
    %33 = vector.shape_cast %32 : vector<1x1x8x128xf32> to vector<8x128xf32>
    %34 = vector.shape_cast %31 : vector<8x128xf32> to vector<1x1x8x128xf32>
    tpu.vector_store %arg4[%c0_25, %c2_26, %c0_27, %c0_28], %34 {strides = array<i32>} : memref<1x3x8x128xf32, #tpu.memory_space<vmem>>, vector<1x1x8x128xf32>,
    return
  }
  func.func @transform_0(%arg0: i32, %arg1: i32) -> (i32, i32) {
    %c1_i32 = arith.constant 1 : i32
    %0 = arith.muli %arg0, %c1_i32 : i32
    %1 = arith.addi %0, %arg1 : i32
    %c0_i32 = arith.constant 0 : i32
    %2 = arith.minsi %1, %c0_i32 : i32
    %c0_i32_0 = arith.constant 0 : i32
    %c0_i32_1 = arith.constant 0 : i32
    return %2, %c0_i32_0 : i32, i32
  }
  func.func @transform_1(%arg0: i32, %arg1: i32) -> (i32, i32) {
    %c1_i32 = arith.constant 1 : i32
    %0 = arith.muli %arg0, %c1_i32 : i32
    %1 = arith.addi %0, %arg1 : i32
    %c0_i32 = arith.constant 0 : i32
    %2 = arith.minsi %1, %c0_i32 : i32
    %c0_i32_0 = arith.constant 0 : i32
    %c0_i32_1 = arith.constant 0 : i32
    return %2, %c0_i32_0 : i32, i32
  }
  func.func @transform_2(%arg0: i32, %arg1: i32) -> (i32, i32, i32, i32) {
    %c0_i32 = arith.constant 0 : i32
    %c0_i32_0 = arith.constant 0 : i32
    %c0_i32_1 = arith.constant 0 : i32
    %c0_i32_2 = arith.constant 0 : i32
    return %arg0, %c0_i32, %c0_i32_0, %c0_i32_1 : i32, i32, i32, i32
  }
}

</mosaic_0001>

<bundles_post_ra>
// kernel: tpu_custom_call.1
= control target key start
LH: loop header
LB: loop body
LE: loop exit
PB: predicated region body
PF: predicated region fallthrough
CT: control target
= control target key end

     0   :  { %7 = vsyncpa [#allocation3], 0  ;;  %s241_s0 = inlined_call_operand.hbm [shape: f32[16,128], index: 0, kind: input, shape index: {}]   ;;  %s242_s1 = inlined_call_operand.hbm [shape: f32[16,128], index: 1, kind: input, shape index: {}]   ;;  %s243_s2 = inlined_call_operand.hbm [shape: f32[1,3,8,128], index: 2, kind: output, shape index: {}]  }
   0x1   :  { %8 = vsyncpa [#allocation6], 0 }
   0x2   :  { %9 = vsyncpa [#allocation4], 0  ;;  %s203_s9 = smov [#allocation2]  }
   0x3   :  { %s21_s10 = sshll.u32 %s203_s9, 4  ;;  %s22_s10 = int_to_ptr.vmem [resolvable:$true] %s21_s10 }
   0x4   :  { %s145_s11 = scalar_lea.vmem %s22_s10, 256  ;;  %p150_p1 = scmp.lt.s32.totalorder %s22_s10, %s22_s10 }
   0x5   :  { %p146_p0 = scmp.ne.s32.totalorder %s22_s10, %s145_s11  ;;  %p151_p2 = scmp.lt.s32.totalorder %s145_s11, %s145_s11 }
   0x7   :  { %p152_p3 = por %p151_p2, %p150_p1 }
   0x9   :  { %p153_p4 = pnand %p152_p3, %p146_p0 }
   0xb   :  { %156 = shalt.err (!%p153_p4)
}
   0xc   :  { %s204_s12 = smov 128   ;;  %s205_s13 = smov 8  }
   0xd   :  { %27 = dma.hbm_to_vmem [thread:$0]  %s241_s0, 256, %s22_s10, [#allocation3], %s204_s12, %s204_s12, %s205_s13  }
   0xe   :  { %s206_s16 = smov [#allocation5]  }
   0xf   :  { %s39_s17 = sshll.u32 %s206_s16, 4  ;;  %s40_s17 = int_to_ptr.vmem [resolvable:$true] %s39_s17 }
  0x10   :  { %s165_s18 = scalar_lea.vmem %s40_s17, 256  ;;  %p170_p6 = scmp.lt.s32.totalorder %s40_s17, %s40_s17 }
  0x11   :  { %p166_p5 = scmp.ne.s32.totalorder %s40_s17, %s165_s18  ;;  %p171_p7 = scmp.lt.s32.totalorder %s165_s18, %s165_s18 }
  0x13   :  { %p172_p8 = por %p171_p7, %p170_p6 }
  0x15   :  { %p173_p9 = pnand %p172_p8, %p166_p5 }
  0x17   :  { %176 = shalt.err (!%p173_p9)
}
  0x18   :  { %45 = dma.hbm_to_vmem [thread:$0]  %s242_s1, 256, %s40_s17, [#allocation6], %s204_s12, %s204_s12, %s205_s13  }
  0x19   :  { %197 = dma.done.wait [#allocation3], 256  }
  0x1a   :  { %198 = vsyncadd [#allocation3], 4294967040 }
  0x1b   :  { %199 = dma.done.wait [#allocation6], 256  }
  0x1c   :  { %200 = vsyncadd [#allocation6], 4294967040  ;;  %v67_v0 = vld [vmem:[#allocation2] sm:$0xff]  ;;  %v68_v1 = vld [vmem:[#allocation2 + $0x8] sm:$0xff]  ;;  %s207_s0 = smov [#allocation7]  }
  0x1d   :  { %v69_v2 = vld [vmem:[#allocation5] sm:$0xff]  ;;  %v70_v3 = vld [vmem:[#allocation5 + $0x8] sm:$0xff]  ;;  %v121_v4 = vmul.f32 -1.442695, %v67_v0  ;;  %v122_v5 = vmul.f32 -1.442695, %v68_v1 }
  0x1e   :  { %v96_v6 = vadd.f32 %v70_v3, %v69_v2  ;;  %s104_s1 = sshll.u32 %s207_s0, 4  ;;  %s105_s1 = int_to_ptr.vmem [resolvable:$true] %s104_s1 }
  0x1f   :  { %129 = vpow2.f32 %v121_v4  ;;  %s177_s21 = scalar_lea.vmem %s105_s1, 384  ;;  %p182_p11 = scmp.lt.s32.totalorder %s105_s1, %s105_s1 }
  0x20   :  { %131 = vpow2.f32 %v122_v5  ;;  %98 = vst [vmem:[#allocation7 + $0x10] sm:$0xff] %v96_v6  ;;  %p178_p10 = scmp.ne.s32.totalorder %s105_s1, %s177_s21  ;;  %p183_p12 = scmp.lt.s32.totalorder %s177_s21, %s177_s21 }
  0x22   :  { %p184_p13 = por %p183_p12, %p182_p11 }
  0x24   :  { %p185_p0 = pnand %p184_p13, %p178_p10 }
  0x2c   :  { %v130_v7 = vpop.eup %129 }
  0x2d   :  { %v132_v8 = vpop.eup %131  ;;  %v77_v9 = vadd.f32 1.0, %v130_v7 }
  0x2e   :  { %v78_v10 = vadd.f32 1.0, %v132_v8 }
  0x2f   :  { %133 = vrcp.f32 %v77_v9 }
  0x30   :  { %135 = vrcp.f32 %v78_v10 }
  0x3c   :  { %v134_v11 = vpop.eup %133 }
  0x3d   :  { %v136_v12 = vpop.eup %135  ;;  %v84_v13 = vmul.f32 %v134_v11, %v69_v2 }
  0x3e   :  { %v85_v14 = vmul.f32 %v136_v12, %v70_v3  ;;  %v91_v15 = vadd.f32 %v136_v12, %v134_v11 }
  0x40   :  { %v86_v16 = vadd.f32 %v85_v14, %v84_v13  ;;  %93 = vst [vmem:[#allocation7 + $0x8] sm:$0xff] %v91_v15 }
  0x42   :  { %88 = vst [vmem:[#allocation7] sm:$0xff] %v86_v16 }
  0x43   :  { %188 = shalt.err (!%p185_p0)
}
  0x44   :  { %110 = dma.vmem_to_hbm [thread:$0]  %s105_s1, 384, %s243_s2, [#allocation4], %s204_s12, %s204_s12, %s205_s13  }
  0x45   :  { %201 = dma.done.wait [#allocation4], 384  }
  0x46   :  { %202 = vsyncadd [#allocation4], 4294966912 }
  0x47   :  { %114 = vsyncpa [#allocation3], 1 }
  0x48   :  { %115 = vsyncpa [#allocation6], 1 }
  0x49   :  { %116 = vsyncpa [#allocation4], 1 }

</bundles_post_ra>
